<compile_context>
chip_gen: v5e
topology: v5e:2x2
jax: 0.10.0
libtpu: 0.0.40
codegen_flags: <defaults>
</compile_context>

<pallas_src>
import jax
import jax.numpy as jnp
from jax.experimental import pallas as pl
from jax.experimental.pallas import tpu as pltpu


def _glm_kernel(x_ref, wt_ref, b_ref, o_ref):
    # x_ref : (tm, Kp) VMEM  — lane-dense tile of packed rows (r orig rows/row).
    # wt_ref: (r, Kp)  VMEM  — block-diagonal (transposed) weight, grid-resident.
    # b_ref : (1, 1)   SMEM  — bias scalar (f32).
    # o_ref : (1, r, tm)     — lane-dense output (tm on lanes), contiguous in HBM.
    acc = jax.lax.dot_general(
        wt_ref[...], x_ref[...],
        dimension_numbers=(((1,), (1,)), ((), ())),   # contract Kp on both sides
        preferred_element_type=jnp.float32,           # f32 accumulate on the MXU
        precision=jax.lax.Precision.HIGHEST,
    )                                                 # -> (r, tm)
    o_ref[0] = (acc + b_ref[0, 0]).astype(o_ref.dtype)


def glm_forward(vX, weight, bias, *, block_rows=None,
                target_vmem_bytes=4 * 1024 * 1024):
    """vX: (..., dim_w); weight: (1, dim_w) or (dim_w,); bias: (1,) or scalar.

    Returns (..., 1), matching torch.nn.Linear(dim_w, 1)(vX).
    """
    orig_shape = vX.shape
    K = int(orig_shape[-1])
    x2d = vX.reshape(-1, K)
    M = int(x2d.shape[0])
    dtype = vX.dtype
    itemsize = jnp.dtype(dtype).itemsize
    sub = max(8, 32 // itemsize)          # min sublane tile: 8 f32, 16 bf16, 32 int8

    if M == 0:
        return jnp.zeros((*orig_shape[:-1], 1), dtype)

    # Lane-dense packing: fold r consecutive rows into one 128-lane row when the
    # reshape is free (pure row-major view, no copy). Otherwise run unpacked (r=1).
    if K < 128 and 128 % K == 0 and M % (128 // K) == 0:
        r = 128 // K
    else:
        r = 1
    Kp = r * K
    P = M // r                                          # packed row count (exact)
    x_p = x2d.reshape(P, Kp)                            # free view, no data movement

    w_row = jnp.asarray(weight).reshape(1, K).astype(dtype)
    if r == 1:
        wt = w_row                                      # (1, K)
    else:
        # (r, r*K) with w on the j-th diagonal block -> r outputs per packed row.
        wt = jnp.kron(jnp.eye(r, dtype=dtype), w_row)
    b_smem = jnp.asarray(bias).reshape(1, 1).astype(jnp.float32)

    # Row tile sized by a per-buffer VMEM byte budget (counting lane padding).
    lane_w = ((Kp + 127) // 128) * 128
    if block_rows is None:
        block_rows = target_vmem_bytes // (lane_w * itemsize)
    tm = max(sub, (int(block_rows) // sub) * sub)       # dtype-aware sublane multiple
    if tm >= P:
        tm = P                                          # full-dim block (always legal)
    num_tiles = pl.cdiv(P, tm)                          # partial tail block, pad-free

    out = pl.pallas_call(
        _glm_kernel,
        out_shape=jax.ShapeDtypeStruct((num_tiles, r, tm), dtype),
        grid_spec=pltpu.PrefetchScalarGridSpec(
            num_scalar_prefetch=0,
            grid=(num_tiles,),
            in_specs=[
                pl.BlockSpec((tm, Kp), lambda i: (i, 0)),            # streamed rows
                pl.BlockSpec((r, Kp), lambda i: (0, 0)),             # resident weight
                pl.BlockSpec(memory_space=pltpu.MemorySpace.SMEM),   # bias scalar
            ],
            out_specs=pl.BlockSpec((1, r, tm), lambda i: (i, 0, 0)),
        ),
        compiler_params=pltpu.CompilerParams(
            dimension_semantics=("parallel",),
            vmem_limit_bytes=32 * 1024 * 1024,
        ),
    )(x_p, wt, b_smem)

    # out[i, j, p] is the result for original row (i*tm + p)*r + j.
    # Rows of the partial tail tile beyond P are garbage (computed on stale
    # VMEM) and are sliced off here — never reduce over the slab before slicing.
    flat = jnp.transpose(out, (0, 2, 1)).reshape(num_tiles * tm * r)[:M]
    return flat.reshape(*orig_shape[:-1], 1)


if __name__ == "__main__":
    dim_w = 32
    key = jax.random.PRNGKey(0)
    kx, kw, kb, kx2, kx3 = jax.random.split(key, 5)

    # Deterministic PyTorch-Linear-style init.
    bound = 1.0 / (dim_w ** 0.5)
    weight = jax.random.uniform(kw, (1, dim_w), jnp.float32, -bound, bound)
    bias = jax.random.uniform(kb, (1,), jnp.float32, -bound, bound)

    def ref_fn(x):
        return x.astype(jnp.float32) @ weight.T + bias

    # 1) batch=2, locations=64, dim_w=32 -> M=128: lane-packed path (r=4), single tile.
    vX = jax.random.normal(kx, (2, 64, dim_w), jnp.float32)
    out = jax.block_until_ready(glm_forward(vX, weight, bias))
    assert out.shape == (2, 64, 1), out.shape
    assert jnp.allclose(out, ref_fn(vX), atol=1e-4, rtol=1e-4), "mismatch (packed)"

    # 2) Ragged M=111 (not divisible by r=4) -> unpacked fallback, forced small
    #    row tile -> multi-tile grid with a partial tail block.
    vX2 = jax.random.normal(kx2, (3, 37, dim_w), jnp.float32)
    out2 = jax.block_until_ready(glm_forward(vX2, weight, bias, block_rows=64))
    assert out2.shape == (3, 37, 1), out2.shape
    assert jnp.allclose(out2, ref_fn(vX2), atol=1e-4, rtol=1e-4), "mismatch (ragged)"

    # 3) Packed path with multiple tiles + partial tail (M=640, P=160, tm=64).
    vX3 = jax.random.normal(kx3, (4, 160, dim_w), jnp.float32)
    out3 = jax.block_until_ready(glm_forward(vX3, weight, bias, block_rows=64))
    assert out3.shape == (4, 160, 1), out3.shape
    assert jnp.allclose(out3, ref_fn(vX3), atol=1e-4, rtol=1e-4), "mismatch (packed multi-tile)"

    # 4) bf16 input: dtype-dependent sublane tile, bf16 weight, f32 accumulate.
    vX4 = jax.random.normal(kx, (2, 320, dim_w), jnp.float32).astype(jnp.bfloat16)
    out4 = jax.block_until_ready(glm_forward(vX4, weight, bias))
    ref4 = vX4.astype(jnp.float32) @ weight.astype(jnp.bfloat16).astype(jnp.float32).T + bias
    assert out4.shape == (2, 320, 1), out4.shape
    assert jnp.allclose(out4.astype(jnp.float32), ref4, atol=2e-2, rtol=2e-2), "mismatch (bf16)"

    print("KERNEL_OK")
</pallas_src>

<mosaic_0001>
module attributes {stable_mosaic.version = 11 : i64} {
  func.func @_glm_kernel(%arg0: i32, %arg1: memref<32x128xf32, #tpu.memory_space<vmem>>, %arg2: memref<4x128xf32, #tpu.memory_space<vmem>>, %arg3: memref<1x1xf32, #tpu.memory_space<smem>>, %arg4: memref<1x4x32xf32, #tpu.memory_space<vmem>>) attributes {dimension_semantics = [#tpu.dimension_semantics<parallel>], iteration_bounds = array<i64: 1>, scalar_prefetch = 0 : i64, scratch_operands = 0 : i64, tpu.core_type = #tpu.core_type<tc>, window_params = [{transform_indices = @transform_0, window_bounds = array<i64: 32, 128>}, {pipeline_mode = #tpu.pipeline_mode<synchronous>, transform_indices = @transform_1, window_bounds = array<i64: 4, 128>}, {transform_indices = @transform_2, window_bounds = array<i64: 1, 1>}, {transform_indices = @transform_3, window_bounds = array<i64: 1, 4, 32>}]} {
    %c0 = arith.constant 0 : index
    %c0_0 = arith.constant 0 : index
    %0 = vector.load %arg2[%c0, %c0_0] : memref<4x128xf32, #tpu.memory_space<vmem>>, vector<4x128xf32>
    %c0_1 = arith.constant 0 : index
    %c0_2 = arith.constant 0 : index
    %1 = vector.load %arg1[%c0_1, %c0_2] : memref<32x128xf32, #tpu.memory_space<vmem>>, vector<32x128xf32>
    %cst = arith.constant dense<0.000000e+00> : vector<4x32xf32>
    %2 = tpu.matmul %0, %1, %cst {dimension_numbers = #tpu.dot_dimension_numbers<[1], [1], [0], [0], [0, 0, 1, 0], [], []>, precision = #tpu.contract_precision<fp32>} : vector<4x128xf32>, vector<32x128xf32>, vector<4x32xf32> -> vector<4x32xf32>
    %c0_3 = arith.constant 0 : index
    %c0_4 = arith.constant 0 : index
    %3 = memref.load %arg3[%c0_3, %c0_4] : memref<1x1xf32, #tpu.memory_space<smem>>
    %4 = vector.broadcast %3 : f32 to vector<4x32xf32>
    %5 = arith.addf %2, %4 : vector<4x32xf32>
    %c0_5 = arith.constant 0 : index
    %c0_6 = arith.constant 0 : index
    %c0_7 = arith.constant 0 : index
    %6 = vector.load %arg4[%c0_5, %c0_6, %c0_7] : memref<1x4x32xf32, #tpu.memory_space<vmem>>, vector<1x4x32xf32>
    %7 = vector.shape_cast %6 : vector<1x4x32xf32> to vector<4x32xf32>
    %8 = vector.shape_cast %5 : vector<4x32xf32> to vector<1x4x32xf32>
    tpu.vector_store %arg4[%c0_5, %c0_6, %c0_7], %8 {strides = array<i32>} : memref<1x4x32xf32, #tpu.memory_space<vmem>>, vector<1x4x32xf32>,
    return
  }
  func.func @transform_0(%arg0: i32) -> (i32, i32) {
    %c0_i32 = arith.constant 0 : i32
    %c0_i32_0 = arith.constant 0 : i32
    return %arg0, %c0_i32 : i32, i32
  }
  func.func @transform_1(%arg0: i32) -> (i32, i32) {
    %c0_i32 = arith.constant 0 : i32
    %c0_i32_0 = arith.constant 0 : i32
    %c0_i32_1 = arith.constant 0 : i32
    return %c0_i32, %c0_i32_0 : i32, i32
  }
  func.func @transform_2(%arg0: i32) -> (i32, i32) {
    %c0_i32 = arith.constant 0 : i32
    %c0_i32_0 = arith.constant 0 : i32
    %c0_i32_1 = arith.constant 0 : i32
    return %c0_i32, %c0_i32_0 : i32, i32
  }
  func.func @transform_3(%arg0: i32) -> (i32, i32, i32) {
    %c0_i32 = arith.constant 0 : i32
    %c0_i32_0 = arith.constant 0 : i32
    %c0_i32_1 = arith.constant 0 : i32
    return %arg0, %c0_i32, %c0_i32_0 : i32, i32, i32
  }
}

</mosaic_0001>

<bundles_post_ra>
// kernel: tpu_custom_call.1
= control target key start
LH: loop header
LB: loop body
LE: loop exit
PB: predicated region body
PF: predicated region fallthrough
CT: control target
= control target key end

     0   :  { %9 = vsyncpa [#allocation4], 0  ;;  %s378_s0 = inlined_call_operand.hbm [shape: f32[32,128], index: 0, kind: input, shape index: {}]   ;;  %s379_s1 = inlined_call_operand.hbm [shape: f32[4,128], index: 1, kind: input, shape index: {}]   ;;  %s380_s2 = inlined_call_operand.<no memory space> [shape: f32[1,1], index: 2, kind: input, shape index: {}]   ;;  %s381_s3 = inlined_call_operand.hbm [shape: f32[1,4,32], index: 3, kind: output, shape index: {}]  }
   0x1   :  { %10 = vsyncpa [#allocation7], 0 }
   0x2   :  { %11 = vsyncpa [#allocation5], 0  ;;  %s16_s14 = sshll.u32 %s378_s0, 4  ;;  %s341_s15 = smov [#allocation3]   ;;  %s17_s14 = int_to_ptr.hbm [resolvable:$true] %s16_s14 }
   0x3   :  { %s18_s16 = sshll.u32 %s341_s15, 4  ;;  %s30_s19 = sshll.u32 %s379_s1, 4  ;;  %s19_s16 = int_to_ptr.vmem [resolvable:$true] %s18_s16  ;;  %s31_s19 = int_to_ptr.hbm [resolvable:$true] %s30_s19 }
   0x4   :  { %s342_s20 = smov 128   ;;  %s343_s21 = smov 8  }
   0x5   :  { %24 = dma.hbm_to_vmem [thread:$0]  %s17_s14, 512, %s19_s16, [#allocation4], %s342_s20, %s342_s20, %s343_s21  }
   0x6   :  { %s344_s22 = smov [#allocation6]  }
   0x7   :  { %s32_s23 = sshll.u32 %s344_s22, 4  ;;  %s33_s23 = int_to_ptr.vmem [resolvable:$true] %s32_s23 }
   0x8   :  { %35 = dma.hbm_to_vmem [thread:$0]  %s31_s19, 64, %s33_s23, [#allocation7]  }
   0x9   :  { %335 = dma.done.wait [#allocation4], 512  }
   0xa   :  { %336 = vsyncadd [#allocation4], 4294966784 }
   0xb   :  { %337 = dma.done.wait [#allocation7], 64  }
   0xc   :  { %338 = vsyncadd [#allocation7], 4294967232  ;;  %v50_v0 = vld [vmem:[#allocation3 + $0x18] sm:$0xff]  ;;  %v49_v1 = vld [vmem:[#allocation3 + $0x10] sm:$0xff]  ;;  %v52_v30 = vstv %s380_s2  ;;  %s345_s24 = smov [#allocation8]   ;;  %s247_s28 = sshll.u32 %s381_s3, 4  ;;  %s248_s28 = int_to_ptr.hbm [resolvable:$true] %s247_s28 }
   0xd   :  { %v48_v2 = vld [vmem:[#allocation3 + $0x8] sm:$0xff]  ;;  %v65_v3 = vand.u32 4294901760, %v50_v0  ;;  %v67_v4 = vand.u32 4294901760, %v49_v1  ;;  %v47_v6 = vld [vmem:[#allocation3] sm:$0xff]  ;;  %s245_s25 = sshll.u32 %s345_s24, 4  ;;  %vm238_vm0 = vcmask 257024   ;;  %s246_s25 = int_to_ptr.vmem [resolvable:$true] %s245_s25 }
   0xe   :  { %v69_v5 = vand.u32 4294901760, %v48_v2  ;;  %v46_v7 = vld [vmem:[#allocation6] sm:$0xf]  ;;  %v71_v12 = vand.u32 4294901760, %v47_v6 }
   0xf   :  { %v73_v8 = vand.u32 4294901760, %v46_v7  ;;  %66 = vmatpush.xpose.msra.mxu0 %v65_v3  ;;  %v95_v9 = vsub.f32 %v50_v0, %v65_v3  ;;  %166 = vmatpush.xpose.msra.mxu3 %v65_v3  ;;  %v101_v10 = vsub.f32 %v49_v1, %v67_v4 }
  0x10   :  { %v107_v11 = vsub.f32 %v48_v2, %v69_v5  ;;  %v113_v20 = vsub.f32 %v47_v6, %v71_v12 }
  0x11   :  { %v74_v13 = vsub.f32 %v46_v7, %v73_v8  ;;  %v96_v14 = vand.u32 4294901760, %v95_v9  ;;  %137 = vmatpush.xpose.msra.mxu2 %v95_v9  ;;  %v102_v15 = vand.u32 4294901760, %v101_v10 }
  0x12   :  { %v108_v19 = vand.u32 4294901760, %v107_v11  ;;  %v114_v25 = vand.u32 4294901760, %v113_v20 }
  0x13   :  { %v75_v16 = vand.u32 4294901760, %v74_v13  ;;  %v97_v17 = vsub.f32 %v95_v9, %v96_v14  ;;  %68 = vmatpush.xpose.msra.mxu0 %v67_v4  ;;  %v103_v18 = vsub.f32 %v101_v10, %v102_v15  ;;  %168 = vmatpush.xpose.msra.mxu3 %v67_v4 }
  0x14   :  { %v109_v24 = vsub.f32 %v107_v11, %v108_v19  ;;  %v115_v28 = vsub.f32 %v113_v20, %v114_v25 }
  0x15   :  { %v98_v21 = vand.u32 4294901760, %v97_v17  ;;  %140 = vmatpush.xpose.msra.mxu2 %v101_v10  ;;  %v76_v22 = vsub.f32 %v74_v13, %v75_v16  ;;  %v104_v23 = vand.u32 4294901760, %v103_v18 }
  0x16   :  { %v110_v27 = vand.u32 4294901760, %v109_v24  ;;  %v116_v29 = vand.u32 4294901760, %v115_v28 }
  0x17   :  { %99 = vmatpush.xpose.msra.mxu1 %v98_v21  ;;  %70 = vmatpush.xpose.msra.mxu0 %v69_v5  ;;  %v77_v26 = vand.u32 4294901760, %v76_v22 }
  0x18   :  { %170 = vmatpush.xpose.msra.mxu3 %v69_v5 }
  0x19   :  { %143 = vmatpush.xpose.msra.mxu2 %v107_v11 }
  0x1b   :  { %105 = vmatpush.xpose.msra.mxu1 %v104_v23  ;;  %72 = vmatpush.xpose.msra.mxu0 %v71_v12 }
  0x1c   :  { %172 = vmatpush.xpose.msra.mxu3 %v71_v12 }
  0x1d   :  { %146 = vmatpush.xpose.msra.mxu2 %v113_v20 }
  0x1e   :  { %78 = vmatmul.f32.vlgmr.msra.gmra.mxu0 %v77_v26 }
  0x1f   :  { %195 = vmatpush.xpose.msrb.mxu0 %v96_v14  ;;  %111 = vmatpush.xpose.msra.mxu1 %v110_v27 }
  0x20   :  { %176 = vmatmul.f32.vlgmr.msra.gmra.mxu3 %v75_v16  ;;  %149 = vmatmul.f32.vlgmr.msra.gmra.mxu2 %v74_v13 }
  0x23   :  { %199 = vmatpush.xpose.msrb.mxu0 %v102_v15  ;;  %117 = vmatpush.xpose.msra.mxu1 %v116_v29 }
  0x26   :  { %119 = vmatmul.f32.vlgmr.msra.gmra.mxu1 %v73_v8 }
  0x27   :  { %226 = vmatpush.xpose.msrb.mxu1 %v65_v3  ;;  %203 = vmatpush.xpose.msrb.mxu0 %v108_v19 }
  0x2b   :  { %228 = vmatpush.xpose.msrb.mxu1 %v67_v4  ;;  %207 = vmatpush.xpose.msrb.mxu0 %v114_v25 }
  0x2e   :  { %209 = vmatmul.f32.vlgmr.msrb.gmra.mxu0 %v73_v8 }
  0x2f   :  { %230 = vmatpush.xpose.msrb.mxu1 %v69_v5 }
  0x33   :  { %232 = vmatpush.xpose.msrb.mxu1 %v71_v12 }
  0x36   :  { %234 = vmatmul.f32.vlgmr.msrb.gmra.mxu1 %v73_v8 }
  0x9b   :  { %v79_v31 = vpop.f32.mrf.mxu0 }
  0x9c   :  { %v80_v32 = vadd.f32 %v79_v31, %v52_v30 }
  0xa3   :  { %v120_v33 = vpop.f32.mrf.mxu1  ;;  %v150_v34 = vpop.f32.mrf.mxu2 }
  0xa4   :  { %v121_v35 = vadd.f32 %v120_v33, %v80_v32  ;;  %v177_v37 = vpop.f32.mrf.mxu3 }
  0xa6   :  { %v151_v36 = vadd.f32 %v150_v34, %v121_v35 }
  0xa8   :  { %v178_v38 = vadd.f32 %v177_v37, %v151_v36 }
  0xab   :  { %v210_v39 = vpop.f32.mrf.mxu0 }
  0xac   :  { %v211_v40 = vadd.f32 %v210_v39, %v178_v38 }
  0xb3   :  { %v235_v41 = vpop.f32.mrf.mxu1 }
  0xb4   :  { %v236_v42 = vadd.f32 %v235_v41, %v211_v40 }
  0xb6   :  { %239 = vst.msk [vmem:[#allocation8] sm:$0xf] %vm238_vm0, %v236_v42 }
  0xb7   :  { %250 = dma.vmem_to_hbm [thread:$0]  %s246_s25, 64, %s248_s28, [#allocation5]  }
  0xb8   :  { %339 = dma.done.wait [#allocation5], 64  }
  0xb9   :  { %340 = vsyncadd [#allocation5], 4294967232 }
  0xba   :  { %255 = vsyncpa [#allocation4], 1 }
  0xbb   :  { %256 = vsyncpa [#allocation7], 1 }
  0xbc   :  { %257 = vsyncpa [#allocation5], 1 }

</bundles_post_ra>
